<compile_context>
chip_gen: v6e
topology: v6e:2x2x1
jax: 0.10.0
libtpu: 0.0.40
codegen_flags: <defaults>
</compile_context>

<pallas_src>
import jax
import jax.numpy as jnp
from jax.experimental import pallas as pl
from jax.experimental.pallas import tpu as pltpu

BN_EPS = 1e-5


def _round_up(a, b):
    return -(-a // b) * b


def _cdiv(a, b):
    return -(-a // b)


def _conv_relu_stats_kernel(pt_ref, w_ref, yt_ref, stats_ref):
    # pt_ref    : (K, TM)    patches^T tile, M on lanes (lane-dense load)
    # w_ref     : (OC, K)    flattened conv weight
    # yt_ref    : (OC, TM)   conv+ReLU activation tile (lane-dense store)
    # stats_ref : (1, OC, 2) [sum, sum_of_squares] per channel for this tile (f32)
    y = jnp.dot(w_ref[...], pt_ref[...], preferred_element_type=jnp.float32)
    y = jnp.maximum(y, 0.0)                           # ReLU
    yt_ref[...] = y.astype(yt_ref.dtype)
    psum = jnp.sum(y, axis=1, keepdims=True)          # (OC, 1) cross-lane reduce (XLU)
    psqs = jnp.sum(y * y, axis=1, keepdims=True)      # (OC, 1)
    # Single merged (OC, 2) store -> one small output DMA per grid step instead
    # of two.  Built with a lane-select (iota + where) to stay on ops that are
    # guaranteed to lower cleanly (no tiny minor-dim concatenate).
    col = jax.lax.broadcasted_iota(jnp.int32, (psum.shape[0], 2), 1)
    stats_ref[...] = jnp.where(col == 0, psum, psqs)[None]


def _choose_m_tile(M, K, OC, in_itemsize, out_itemsize, cap=1024):
    """Pick a lane-dense M tile (multiple of 128) and the padded M extent."""
    m128 = _round_up(M, 128)
    # VMEM budget: double-buffered (K, TM) input + (OC, TM) output tiles must
    # stay well inside the v5e 16 MiB scoped-VMEM default as K = C*s*s grows
    # (v6e/v7x default to 32 MiB scoped, so v5e is the binding constraint).
    col_bytes = 2 * (K * in_itemsize + OC * out_itemsize)
    vmem_cap = max(128, (8 * 1024 * 1024 // col_bytes) // 128 * 128)
    TM = min(cap, vmem_cap, m128)
    # v7x has 2 TensorCores: keep the "parallel" M axis at >= 2 tiles whenever
    # the problem is big enough to split (a tile can't drop below 128 lanes).
    if m128 > 128 and _cdiv(M, TM) < 2:
        TM = _round_up(_cdiv(M, 2), 128)
    Mp = _round_up(M, TM)
    return TM, Mp


def conv_relu_bn_forward(x, weight, gamma, beta, stride, *, eps=BN_EPS):
    """x: (N, C, H, W), weight: (OC, C, s, s), gamma/beta: (OC,).

    Returns bn(relu(conv(x))) as (N, OC, H//s, W//s) with training-mode
    (biased) batch statistics, matching the PyTorch module's forward.
    """
    N, C, H, W = x.shape
    OC = weight.shape[0]
    s = stride
    Ho, Wo = H // s, W // s
    M = N * Ho * Wo
    K = C * s * s
    dt = x.dtype  # big streams stay in the input dtype (bf16 in -> bf16 through)

    # im2col emitted transposed (K, M): M rides the lane axis so every Pallas
    # load/store is lane-dense.  No f32 upcast — the MXU accumulates in f32 via
    # preferred_element_type.
    # TODO(synk): for an NHWC producer/consumer this transpose (and the final
    # NCHW transpose below) disappears; each is a full HBM read+write.
    pt = x.reshape(N, C, Ho, s, Wo, s).transpose(1, 3, 5, 0, 2, 4).reshape(K, M)
    w2 = weight.reshape(OC, K).astype(dt)

    itemsize = jnp.dtype(dt).itemsize
    TM, Mp = _choose_m_tile(M, K, OC, itemsize, itemsize)
    if Mp != M:
        # Zero-padding M is statistics-safe ONLY because the conv has no bias
        # and ReLU(0 @ W) == 0; the true element count M is the divisor below.
        pt = jnp.pad(pt, ((0, 0), (0, Mp - M)))
    num_tiles = Mp // TM

    # ---- single pallas_call: conv (matmul) + ReLU + per-tile partial BN stats ----
    yt, stats = pl.pallas_call(
        _conv_relu_stats_kernel,
        out_shape=(
            jax.ShapeDtypeStruct((OC, Mp), dt),                   # y^T activation
            jax.ShapeDtypeStruct((num_tiles, OC, 2), jnp.float32),  # partial stats
        ),
        grid=(num_tiles,),
        in_specs=[
            pl.BlockSpec((K, TM), lambda i: (0, i)),
            pl.BlockSpec((OC, K), lambda i: (0, 0)),
        ],
        out_specs=(
            pl.BlockSpec((OC, TM), lambda i: (0, i)),
            pl.BlockSpec((1, OC, 2), lambda i: (i, 0, 0)),
        ),
        compiler_params=pltpu.CompilerParams(
            dimension_semantics=("parallel",)),
    )(pt, w2)

    # ---- O(OC) finalize: fold BN into one per-channel scale/shift ----
    count = jnp.float32(M)                     # true count (padding excluded)
    tot = jnp.sum(stats, axis=0)               # (OC, 2)
    mean = tot[:, 0] / count
    # TODO(synk): E[y^2]-E[y]^2 in f32 can cancel for very large M; switch to a
    # shifted/two-pass variance if tolerances tighten.
    var = jnp.maximum(tot[:, 1] / count - mean * mean, 0.0)
    inv_std = jax.lax.rsqrt(var + eps)
    scale = gamma.astype(jnp.float32) * inv_std        # (OC,)
    shift = beta.astype(jnp.float32) - mean * scale    # (OC,)
    # TODO(synk): PyTorch BatchNorm2d (training) also updates running_mean /
    # running_var (unbiased); omitted since only the forward output is needed.

    # ---- fused epilogue in plain JAX (no second pallas_call): the per-channel
    # affine fuses with the NCHW layout transform in one XLA pass, removing a
    # full read+write of the (OC, M) activation. ----
    y4 = yt[:, :M].reshape(OC, N, Ho, Wo).astype(jnp.float32)
    out = y4 * scale[:, None, None, None] + shift[:, None, None, None]
    return out.astype(dt).transpose(1, 0, 2, 3)        # -> (N, OC, Ho, Wo)


if __name__ == "__main__":
    key = jax.random.PRNGKey(0)
    kx, kw = jax.random.split(key)

    # Small shapes consistent with the module: in_channel=4, out_channel=8, stride=2
    N, C, H, W = 2, 4, 16, 16
    OC, stride = 8, 2

    x = jax.random.normal(kx, (N, C, H, W), dtype=jnp.float32)
    weight = 0.1 * jax.random.normal(kw, (OC, C, stride, stride), dtype=jnp.float32)
    gamma = jnp.linspace(0.5, 1.5, OC, dtype=jnp.float32)
    beta = jnp.linspace(-0.2, 0.2, OC, dtype=jnp.float32)

    out = conv_relu_bn_forward(x, weight, gamma, beta, stride)
    jax.block_until_ready(out)
    assert out.shape == (N, OC, H // stride, W // stride)

    # pure-JAX reference (training-mode BN with biased batch variance)
    y_ref = jax.lax.conv_general_dilated(
        x, weight, window_strides=(stride, stride), padding="VALID",
        dimension_numbers=("NCHW", "OIHW", "NCHW"))
    y_ref = jnp.maximum(y_ref, 0.0)
    mu = y_ref.mean(axis=(0, 2, 3), keepdims=True)
    var = y_ref.var(axis=(0, 2, 3), keepdims=True)
    ref = ((y_ref - mu) * jax.lax.rsqrt(var + BN_EPS)
           * gamma.reshape(1, OC, 1, 1) + beta.reshape(1, OC, 1, 1))
    assert jnp.allclose(out, ref, atol=2e-3, rtol=2e-3), "mismatch vs reference"

    print("KERNEL_OK")
</pallas_src>

<mosaic_0001>
module attributes {stable_mosaic.version = 11 : i64} {
  func.func @_conv_relu_stats_kernel(%arg0: i32, %arg1: memref<16x128xf32, #tpu.memory_space<vmem>>, %arg2: memref<8x16xf32, #tpu.memory_space<vmem>>, %arg3: memref<8x128xf32, #tpu.memory_space<vmem>>, %arg4: memref<1x8x2xf32, #tpu.memory_space<vmem>>) attributes {dimension_semantics = [#tpu.dimension_semantics<parallel>], iteration_bounds = array<i64: 1>, scalar_prefetch = 0 : i64, scratch_operands = 0 : i64, tpu.core_type = #tpu.core_type<tc>, window_params = [{transform_indices = @transform_0, window_bounds = array<i64: 16, 128>}, {pipeline_mode = #tpu.pipeline_mode<synchronous>, transform_indices = @transform_1, window_bounds = array<i64: 8, 16>}, {transform_indices = @transform_2, window_bounds = array<i64: 8, 128>}, {transform_indices = @transform_3, window_bounds = array<i64: 1, 8, 2>}]} {
    %c0 = arith.constant 0 : index
    %c0_0 = arith.constant 0 : index
    %0 = vector.load %arg2[%c0, %c0_0] : memref<8x16xf32, #tpu.memory_space<vmem>>, vector<8x16xf32>
    %c0_1 = arith.constant 0 : index
    %c0_2 = arith.constant 0 : index
    %1 = vector.load %arg1[%c0_1, %c0_2] : memref<16x128xf32, #tpu.memory_space<vmem>>, vector<16x128xf32>
    %cst = arith.constant dense<0.000000e+00> : vector<8x128xf32>
    %2 = tpu.matmul %0, %1, %cst {dimension_numbers = #tpu.dot_dimension_numbers<[1], [0], [0], [1], [0, 0, 1, 1], [], []>} : vector<8x16xf32>, vector<16x128xf32>, vector<8x128xf32> -> vector<8x128xf32>
    %cst_3 = arith.constant 0.000000e+00 : f32
    %3 = vector.broadcast %cst_3 : f32 to vector<8x128xf32>
    %4 = arith.maximumf %2, %3 : vector<8x128xf32>
    %c0_4 = arith.constant 0 : index
    %c0_5 = arith.constant 0 : index
    %5 = vector.load %arg3[%c0_4, %c0_5] : memref<8x128xf32, #tpu.memory_space<vmem>>, vector<8x128xf32>
    tpu.vector_store %arg3[%c0_4, %c0_5], %4 {strides = array<i32>} : memref<8x128xf32, #tpu.memory_space<vmem>>, vector<8x128xf32>,
    %cst_6 = arith.constant dense<0.000000e+00> : vector<8xf32>
    %6 = vector.multi_reduction <add>, %4, %cst_6 [1] : vector<8x128xf32> to vector<8xf32>
    %7 = vector.shape_cast %6 : vector<8xf32> to vector<8x1xf32>
    %8 = arith.mulf %4, %4 : vector<8x128xf32>
    %cst_7 = arith.constant dense<0.000000e+00> : vector<8xf32>
    %9 = vector.multi_reduction <add>, %8, %cst_7 [1] : vector<8x128xf32> to vector<8xf32>
    %10 = vector.shape_cast %9 : vector<8xf32> to vector<8x1xf32>
    %11 = tpu.iota {dimensions = array<i32: 1>} : vector<8x2xi32>
    %c0_i32 = arith.constant 0 : i32
    %12 = vector.broadcast %c0_i32 : i32 to vector<8x2xi32>
    %13 = arith.cmpi eq, %11, %12 : vector<8x2xi32>
    %14 = vector.shape_cast %7 : vector<8x1xf32> to vector<8x1xf32>
    %15 = vector.broadcast %14 : vector<8x1xf32> to vector<8x2xf32>
    %16 = vector.shape_cast %10 : vector<8x1xf32> to vector<8x1xf32>
    %17 = vector.broadcast %16 : vector<8x1xf32> to vector<8x2xf32>
    %18 = arith.select %13, %15, %17 : vector<8x2xi1>, vector<8x2xf32>
    %19 = vector.shape_cast %18 : vector<8x2xf32> to vector<1x8x2xf32>
    %c0_8 = arith.constant 0 : index
    %c0_9 = arith.constant 0 : index
    %c0_10 = arith.constant 0 : index
    %20 = vector.load %arg4[%c0_8, %c0_9, %c0_10] : memref<1x8x2xf32, #tpu.memory_space<vmem>>, vector<1x8x2xf32>
    tpu.vector_store %arg4[%c0_8, %c0_9, %c0_10], %19 {strides = array<i32>} : memref<1x8x2xf32, #tpu.memory_space<vmem>>, vector<1x8x2xf32>,
    return
  }
  func.func @transform_0(%arg0: i32) -> (i32, i32) {
    %c0_i32 = arith.constant 0 : i32
    %c0_i32_0 = arith.constant 0 : i32
    return %c0_i32, %arg0 : i32, i32
  }
  func.func @transform_1(%arg0: i32) -> (i32, i32) {
    %c0_i32 = arith.constant 0 : i32
    %c0_i32_0 = arith.constant 0 : i32
    %c0_i32_1 = arith.constant 0 : i32
    return %c0_i32, %c0_i32_0 : i32, i32
  }
  func.func @transform_2(%arg0: i32) -> (i32, i32) {
    %c0_i32 = arith.constant 0 : i32
    %c0_i32_0 = arith.constant 0 : i32
    return %c0_i32, %arg0 : i32, i32
  }
  func.func @transform_3(%arg0: i32) -> (i32, i32, i32) {
    %c0_i32 = arith.constant 0 : i32
    %c0_i32_0 = arith.constant 0 : i32
    %c0_i32_1 = arith.constant 0 : i32
    return %arg0, %c0_i32, %c0_i32_0 : i32, i32, i32
  }
}

</mosaic_0001>

<bundles_post_ra>
// kernel: tpu_custom_call.1
= control target key start
LH: loop header
LB: loop body
LE: loop exit
PB: predicated region body
PF: predicated region fallthrough
CT: control target
= control target key end

     0   :  { %9 = vsyncpa [#allocation3], 0  ;;  %s273_s0 = inlined_call_operand.hbm [shape: f32[16,128], index: 0, kind: input, shape index: {}]   ;;  %s274_s1 = inlined_call_operand.hbm [shape: f32[8,16], index: 1, kind: input, shape index: {}]   ;;  %s275_s2 = inlined_call_operand.hbm [shape: f32[8,128], index: 2, kind: output, shape index: {0}]   ;;  %s276_s3 = inlined_call_operand.vmem [shape: f32[1,8,2], index: 3, kind: output, shape index: {1}]  }
   0x1   :  { %10 = vsyncpa [#allocation6], 0 }
   0x2   :  { %11 = vsyncpa [#allocation4], 0  ;;  %s234_s12 = smov [#allocation2]  }
   0x3   :  { %s17_s13 = sshll.u32 %s234_s12, 4  ;;  %s18_s13 = int_to_ptr.vmem [resolvable:$true] %s17_s13 }
   0x4   :  { %s176_s14 = scalar_lea.vmem %s18_s13, 256  ;;  %p181_p1 = scmp.lt.s32.totalorder %s18_s13, %s18_s13 }
   0x5   :  { %p177_p0 = scmp.ne.s32.totalorder %s18_s13, %s176_s14  ;;  %p182_p2 = scmp.lt.s32.totalorder %s176_s14, %s176_s14 }
   0x7   :  { %p183_p3 = por %p182_p2, %p181_p1 }
   0x9   :  { %p184_p4 = pnand %p183_p3, %p177_p0 }
   0xb   :  { %187 = shalt.err (!%p184_p4)
}
   0xc   :  { %s235_s15 = smov 128   ;;  %s236_s16 = smov 8  }
   0xd   :  { %23 = dma.hbm_to_vmem [thread:$0]  %s273_s0, 256, %s18_s13, [#allocation3], %s235_s15, %s235_s15, %s236_s16  }
   0xe   :  { %s237_s19 = smov [#allocation5]  }
   0xf   :  { %s30_s20 = sshll.u32 %s237_s19, 4  ;;  %s31_s20 = int_to_ptr.vmem [resolvable:$true] %s30_s20 }
  0x10   :  { %s196_s21 = scalar_lea.vmem %s31_s20, 128  ;;  %p201_p6 = scmp.lt.s32.totalorder %s31_s20, %s31_s20 }
  0x11   :  { %p197_p5 = scmp.ne.s32.totalorder %s31_s20, %s196_s21  ;;  %p202_p7 = scmp.lt.s32.totalorder %s196_s21, %s196_s21 }
  0x13   :  { %p203_p8 = por %p202_p7, %p201_p6 }
  0x15   :  { %p204_p9 = pnand %p203_p8, %p197_p5 }
  0x17   :  { %207 = shalt.err (!%p204_p9)
}
  0x18   :  { %33 = dma.hbm_to_vmem [thread:$0]  %s274_s1, 128, %s31_s20, [#allocation6]  }
  0x19   :  { %228 = dma.done.wait [#allocation3], 256  }
  0x1a   :  { %229 = vsyncadd [#allocation3], 4294967040 }
  0x1b   :  { %230 = dma.done.wait [#allocation6], 128  }
  0x1c   :  { %231 = vsyncadd [#allocation6], 4294967168  ;;  %v238_v0 = vmov 0.0   ;;  %vm239_vm0 = vmmov 0   ;;  %v42_v1 = vld [vmem:[#allocation2 + $0x8] sm:$0xff]  ;;  %v41_v2 = vld [vmem:[#allocation2] sm:$0xff] }
  0x1d   :  { %154 = vmatprep.subr.mxu0 %v238_v0  ;;  %158 = vmatprep.mubr.msk.f32.mxu0 %vm239_vm0, %v238_v0  ;;  %v40_v3 = vld [vmem:[#allocation5] sm:$0xff]  ;;  %vm43_vm1 = vcmask 130048   ;;  %s240_s0 = smov [#allocation7]  }
  0x1e   :  { %155 = vmatpush3.msra.mxu0 %v42_v1  ;;  %s136_s1 = sshll.u32 %s240_s0, 4  ;;  %s137_s1 = int_to_ptr.vmem [resolvable:$true] %s136_s1 }
  0x1f   :  { %156 = vmatprep.subr.mxu0 %v238_v0  ;;  %s208_s24 = scalar_lea.vmem %s137_s1, 128  ;;  %p213_p11 = scmp.lt.s32.totalorder %s137_s1, %s137_s1 }
  0x20   :  { %157 = vmatpush3.msra.mxu0 %v41_v2  ;;  %p209_p10 = scmp.ne.s32.totalorder %s137_s1, %s208_s24  ;;  %p214_p12 = scmp.lt.s32.totalorder %s208_s24, %s208_s24 }
  0x21   :  { %159 = vmatmul.mubr.msk.f32.vlgmr.msra.gmra.mxu0 %vm43_vm1, %v40_v3 }
  0x22   :  { %p215_p13 = por %p214_p12, %p213_p11 }
  0x24   :  { %p216_p0 = pnand %p215_p13, %p209_p10 }
  0xe1   :  { %v113_v4 = vpop.f32.mrf.mxu0 }
  0xe2   :  { %v117_v5 = vmax.f32 %v113_v4, 0.0 }
  0xe3   :  { %v160_v6 = vpop.f32.mrf.mxu0 }
  0xe4   :  { %118 = vst [vmem:[#allocation7] sm:$0xff] %v117_v5  ;;  %119 = vadd.xlane.f32.xlu0 %v117_v5  ;;  %v121_v7 = vmul.f32 %v117_v5, %v117_v5 }
  0xe8   :  { %122 = vadd.xlane.f32.xlu0 %v121_v7 }
  0xe9   :  { %219 = shalt.err (!%p216_p0)
}
  0xea   :  { %139 = dma.vmem_to_hbm [thread:$0]  %s137_s1, 128, %s275_s2, [#allocation4]   ;;  %v124_v8 = vlaneseq  ;;  %vm128_vm3 = vcmask 15360  }
  0xec   :  { %v125_v9 = vand.u32 127, %v124_v8 }
  0xee   :  { %vm126_vm2 = vcmp.eq.s32.totalorder %v125_v9, 0 }
 0x16d   :  { %v120_v10 = vpop.xlane.xlu0 %119 }
 0x171   :  { %v123_v11 = vpop.xlane.xlu0 %122 }
 0x172   :  { %v127_v12 = vsel %vm126_vm2, %v120_v10, %v123_v11 }
 0x173   :  { %129 = vst.msk [vmem:[%s276_s3] sm:$0xff] %vm128_vm3, %v127_v12 }
 0x174   :  { %232 = dma.done.wait [#allocation4], 128  }
 0x175   :  { %233 = vsyncadd [#allocation4], 4294967168 }
 0x176   :  { %147 = vsyncpa [#allocation3], 1 }
 0x177   :  { %148 = vsyncpa [#allocation6], 1 }
 0x178   :  { %149 = vsyncpa [#allocation4], 1 }

</bundles_post_ra>
